<compile_context>
chip_gen: v5e
topology: v5e:2x2
jax: 0.10.0
libtpu: 0.0.40
codegen_flags: <defaults>
</compile_context>

<pallas_src>
import jax
import jax.numpy as jnp
from jax import lax
from jax.experimental import pallas as pl
from jax.experimental.pallas import tpu as pltpu

EPS = 1e-5  # nn.BatchNorm2d default


# ----------------------------- Pallas kernels ------------------------------ #

def _spconv_matmul_kernel(p4_ref, p1_ref, w4_ref, w1_ref,
                          y4_ref, y1_ref, stats_ref):
    """One (batch, M-tile): two branch matmuls (channel-major) + BN partials.

    p4_ref   : (1, K4, tm) bf16   im2col'd 4x4-branch patches (rows = c,kh,kw)
    p1_ref   : (1, K1, tm) bf16   im2col'd 1x1-branch patches
    w4_ref   : (Np, K4)    bf16   (gwc block-diag + pwc/16)^T
    w1_ref   : (Np, K1)    bf16   (conv1x1/16)^T            (bias dropped)
    y4_ref   : (1, Np, tm) bf16   branch outputs, channel-major
    y1_ref   : (1, Np, tm) bf16
    stats_ref: (1, 1, Np, 4) f32  per-tile [sum4, sumsq4, sum1, sumsq1] columns
    """
    y4 = jnp.dot(w4_ref[...], p4_ref[0], preferred_element_type=jnp.float32)
    y1 = jnp.dot(w1_ref[...], p1_ref[0], preferred_element_type=jnp.float32)
    y4_ref[0] = y4.astype(y4_ref.dtype)
    y1_ref[0] = y1.astype(y1_ref.dtype)
    # per-tile BN partial sums (column stores, XLU lane reductions)
    stats_ref[0, 0, :, 0:1] = jnp.sum(y4, axis=1, keepdims=True)
    stats_ref[0, 0, :, 1:2] = jnp.sum(y4 * y4, axis=1, keepdims=True)
    stats_ref[0, 0, :, 2:3] = jnp.sum(y1, axis=1, keepdims=True)
    stats_ref[0, 0, :, 3:4] = jnp.sum(y1 * y1, axis=1, keepdims=True)


def _spconv_combine_kernel(y4_ref, y1_ref, coef_ref, out_ref):
    """BN affine + softmax-gated combine, pre-folded into 3 coefficients:
       out = y4 * a4 + y1 * a1 + c ; channel-major store of only the real
       `outplanes` channels (result is already NCHW-flat)."""
    y4 = y4_ref[0].astype(jnp.float32)            # (Np, tm)
    y1 = y1_ref[0].astype(jnp.float32)
    a4 = coef_ref[0, :, 0:1]                      # (Np, 1)
    a1 = coef_ref[0, :, 1:2]
    c = coef_ref[0, :, 2:3]
    out = y4 * a4 + y1 * a1 + c                   # (Np, tm)
    out_ref[0] = out[:out_ref.shape[1], :]        # drop padded channels


# ------------------------------ helpers ------------------------------------ #

def _im2col4_T(xs):
    """(B, C, H, W) -> (B, C*16, (H//4)*(W//4)); non-overlapping 4x4 patches,
    rows ordered (c, kh, kw), columns ordered (ho, wo) — channel-major."""
    b, c, h, w = xs.shape
    p = xs.reshape(b, c, h // 4, 4, w // 4, 4)
    p = jnp.transpose(p, (0, 1, 3, 5, 2, 4))          # (B, C, 4, 4, Ho, Wo)
    return p.reshape(b, c * 16, (h // 4) * (w // 4))


def _pick_tiles(m):
    """Fixed lane-friendly spatial tile: single tile for small M, else 512
    (1024 on chips with >=96 MiB VMEM, i.e. v5e/v6e), M padded to a multiple."""
    target = 512
    try:
        if pltpu.get_tpu_info().vmem_capacity_bytes >= 96 * 1024 * 1024:
            target = 1024
    except Exception:
        pass
    if m <= target:
        return m, m, 1
    n_mt = -(-m // target)
    return target, n_mt * target, n_mt


def _vmem_limit(per_step_bytes):
    """Scoped-VMEM cap from the actual working set (+2x headroom for compiler
    temporaries), floored so tiny shapes keep default scratch, capped below the
    v5e/v6e 128 MiB physical (v7x is 64 MiB/TC: tm<=512 keeps us inside)."""
    return int(min(max(2 * per_step_bytes, 32 << 20), 112 << 20))


# ------------------------------ Python wrapper ------------------------------ #

def spconv_4x4_forward(x, params, ratio=0.5, stride=4):
    assert stride == 4
    B, C, H, W = x.shape
    assert H % 4 == 0 and W % 4 == 0
    C4 = int(C * ratio)
    C1 = C - C4
    Co = params["w_pwc"].shape[0]                    # outplanes
    assert C4 % 2 == 0 and Co % 2 == 0, "gwc uses groups=2"
    Ho, Wo = H // 4, W // 4
    M = Ho * Wo
    K4, K1 = C4 * 16, C1 * 16
    Np = ((Co + 15) // 16) * 16                      # sublane/bf16-friendly pad

    tm, Mpad, n_mt = _pick_tiles(M)

    # ---- channel-major im2col (one XLA transpose pass; see TODO above) ----
    p4 = _im2col4_T(x[:, :C4]).astype(jnp.bfloat16)  # (B, K4, M)
    p1 = _im2col4_T(x[:, C4:]).astype(jnp.bfloat16)  # (B, K1, M)
    if Mpad != M:
        pad = ((0, 0), (0, 0), (0, Mpad - M))
        p4 = jnp.pad(p4, pad)   # zero columns -> zero y -> BN sums stay exact
        p1 = jnp.pad(p1, pad)

    # ---- fold weights (tiny XLA glue, once per call) ----
    w_gwc = params["w_gwc"].astype(jnp.float32)      # (Co, C4//2, 4, 4)
    Og, Cg = Co // 2, C4 // 2
    wg_full = jnp.zeros((C4, 4, 4, Co), jnp.float32)
    for g in range(2):                               # groups=2 -> block diagonal
        blk = jnp.transpose(w_gwc[g * Og:(g + 1) * Og], (1, 2, 3, 0))
        wg_full = wg_full.at[g * Cg:(g + 1) * Cg, :, :, g * Og:(g + 1) * Og].set(blk)
    wg_flat = wg_full.reshape(K4, Co)
    wp = jnp.transpose(params["w_pwc"][:, :, 0, 0]).astype(jnp.float32)  # (C4, Co)
    w1 = jnp.transpose(params["w_1x1"][:, :, 0, 0]).astype(jnp.float32)  # (C1, Co)
    # AvgPool2d(4,4) folded into the 1x1 convs: every patch position gets w/16
    w4T = (wg_flat + jnp.repeat(wp, 16, axis=0) / 16.0).T                # (Co, K4)
    w1T = (jnp.repeat(w1, 16, axis=0) / 16.0).T                          # (Co, K1)
    w4T = jnp.pad(w4T, ((0, Np - Co), (0, 0))).astype(jnp.bfloat16)
    w1T = jnp.pad(w1T, ((0, Np - Co), (0, 0))).astype(jnp.bfloat16)
    # NOTE: conv1x1's bias is intentionally dropped — training-mode BatchNorm
    # of (conv + const) == BatchNorm of conv, and it cancels in the gate head.

    # ---- kernel A: two split branch matmuls + per-tile BN partial sums ----
    vmem_a = _vmem_limit(
        2 * ((K4 + K1) * tm * 2 + 2 * Np * tm * 2)   # double-buffered bf16 tiles
        + 2 * Np * (K4 + K1) * 2                     # weight panels
        + 2 * Np * 4 * 4)                            # stats
    y4, y1, stats = pl.pallas_call(
        _spconv_matmul_kernel,
        out_shape=(jax.ShapeDtypeStruct((B, Np, Mpad), jnp.bfloat16),
                   jax.ShapeDtypeStruct((B, Np, Mpad), jnp.bfloat16),
                   jax.ShapeDtypeStruct((B, n_mt, Np, 4), jnp.float32)),
        grid=(B, n_mt),
        in_specs=[pl.BlockSpec((1, K4, tm), lambda b, m: (b, 0, m)),
                  pl.BlockSpec((1, K1, tm), lambda b, m: (b, 0, m)),
                  pl.BlockSpec((Np, K4), lambda b, m: (0, 0)),
                  pl.BlockSpec((Np, K1), lambda b, m: (0, 0))],
        out_specs=(pl.BlockSpec((1, Np, tm), lambda b, m: (b, 0, m)),
                   pl.BlockSpec((1, Np, tm), lambda b, m: (b, 0, m)),
                   pl.BlockSpec((1, 1, Np, 4), lambda b, m: (b, m, 0, 0))),
        compiler_params=pltpu.CompilerParams(
            dimension_semantics=("parallel", "parallel"),
            vmem_limit_bytes=vmem_a),
    )(p4, p1, w4T, w1T)

    # ---- BN statistics (training mode), gate heads, coefficient folding ----
    s = jnp.sum(stats, axis=(0, 1))                  # (Np, 4) global sums
    n = B * M                                        # padded columns are exact 0
    mean4, mean1 = s[:, 0] / n, s[:, 2] / n
    # TODO(synk): E[x^2]-E[x]^2 in f32 can cancel badly when |mean| >> std.
    var4 = jnp.maximum(s[:, 1] / n - mean4 * mean4, 0.0)
    var1 = jnp.maximum(s[:, 3] / n - mean1 * mean1, 0.0)

    def padc(v):
        return jnp.pad(v.astype(jnp.float32), (0, Np - Co))

    scale4 = padc(params["gamma1"]) * lax.rsqrt(var4 + EPS)
    shift4 = padc(params["beta1"]) - mean4 * scale4
    scale1 = padc(params["gamma2"]) * lax.rsqrt(var1 + EPS)
    shift1 = padc(params["beta2"]) - mean1 * scale1

    # AdaptiveAvgPool2d(1) of BN output == affine of the per-batch channel mean
    r4 = (jnp.sum(stats[:, :, :, 0], axis=1) / M) * scale4[None] + shift4[None]
    r1 = (jnp.sum(stats[:, :, :, 2], axis=1) / M) * scale1[None] + shift1[None]
    gates = jax.nn.softmax(jnp.stack([r4, r1], axis=-1), axis=-1)   # (B, Np, 2)
    g4, g1 = gates[..., 0], gates[..., 1]
    coef = jnp.stack([scale4[None] * g4,                            # a4
                      scale1[None] * g1,                            # a1
                      shift4[None] * g4 + shift1[None] * g1],       # c
                     axis=-1).astype(jnp.float32)                   # (B, Np, 3)

    # ---- kernel B: fused BN/gate combine, channel-major (NCHW-flat) store ----
    vmem_b = _vmem_limit(2 * (2 * Np * tm * 2 + Co * tm * 4) + 2 * Np * 3 * 4)
    out = pl.pallas_call(
        _spconv_combine_kernel,
        out_shape=jax.ShapeDtypeStruct((B, Co, Mpad), jnp.float32),
        grid=(B, n_mt),
        in_specs=[pl.BlockSpec((1, Np, tm), lambda b, m: (b, 0, m)),
                  pl.BlockSpec((1, Np, tm), lambda b, m: (b, 0, m)),
                  pl.BlockSpec((1, Np, 3), lambda b, m: (b, 0, 0))],
        out_specs=pl.BlockSpec((1, Co, tm), lambda b, m: (b, 0, m)),
        compiler_params=pltpu.CompilerParams(
            dimension_semantics=("parallel", "parallel"),
            vmem_limit_bytes=vmem_b),
    )(y4, y1, coef)

    if Mpad != M:
        out = out[:, :, :M]
    return out.reshape(B, Co, Ho, Wo)


# ------------------------- pure-JAX reference (check) ----------------------- #

def reference_forward(x, params, ratio=0.5):
    B, C, H, W = x.shape
    C4 = int(C * ratio)
    x4, x1 = x[:, :C4], x[:, C4:]
    dn = ("NCHW", "OIHW", "NCHW")

    def avgpool4(t):
        b, c, h, w = t.shape
        return t.reshape(b, c, h // 4, 4, w // 4, 4).mean(axis=(3, 5))

    def bn(t, gamma, beta):
        m = t.mean(axis=(0, 2, 3), keepdims=True)
        v = ((t - m) ** 2).mean(axis=(0, 2, 3), keepdims=True)
        return (t - m) / jnp.sqrt(v + EPS) * gamma[None, :, None, None] \
            + beta[None, :, None, None]

    gwc = lax.conv_general_dilated(x4, params["w_gwc"], (4, 4), "VALID",
                                   dimension_numbers=dn, feature_group_count=2)
    pwc = lax.conv_general_dilated(avgpool4(x4), params["w_pwc"], (1, 1), "VALID",
                                   dimension_numbers=dn)
    out44 = bn(gwc + pwc, params["gamma1"], params["beta1"])
    r4 = out44.mean(axis=(2, 3))

    out11 = lax.conv_general_dilated(avgpool4(x1), params["w_1x1"], (1, 1), "VALID",
                                     dimension_numbers=dn)
    out11 = bn(out11 + params["b_1x1"][None, :, None, None],
               params["gamma2"], params["beta2"])
    r1 = out11.mean(axis=(2, 3))

    g = jax.nn.softmax(jnp.stack([r4, r1], axis=2), axis=2)
    return out11 * g[:, :, 1][:, :, None, None] + out44 * g[:, :, 0][:, :, None, None]


# ------------------------------------ main ---------------------------------- #

if __name__ == "__main__":
    B, inplanes, outplanes, H, W = 2, 8, 8, 16, 16
    ratio = 0.5
    C4 = int(inplanes * ratio)

    key = jax.random.PRNGKey(0)
    ks = jax.random.split(key, 9)
    params = {
        "w_gwc": 0.1 * jax.random.normal(ks[0], (outplanes, C4 // 2, 4, 4), jnp.float32),
        "w_pwc": 0.1 * jax.random.normal(ks[1], (outplanes, C4, 1, 1), jnp.float32),
        "w_1x1": 0.1 * jax.random.normal(ks[2], (outplanes, inplanes - C4, 1, 1), jnp.float32),
        "b_1x1": 0.1 * jax.random.normal(ks[3], (outplanes,), jnp.float32),
        "gamma1": 1.0 + 0.1 * jax.random.normal(ks[4], (outplanes,), jnp.float32),
        "beta1": 0.1 * jax.random.normal(ks[5], (outplanes,), jnp.float32),
        "gamma2": 1.0 + 0.1 * jax.random.normal(ks[6], (outplanes,), jnp.float32),
        "beta2": 0.1 * jax.random.normal(ks[7], (outplanes,), jnp.float32),
    }
    x = jax.random.normal(ks[8], (B, inplanes, H, W), jnp.float32)

    out = jax.block_until_ready(spconv_4x4_forward(x, params, ratio=ratio))
    ref = jax.block_until_ready(reference_forward(x, params, ratio=ratio))

    assert out.shape == (B, outplanes, H // 4, W // 4), out.shape
    max_err = float(jnp.max(jnp.abs(out - ref)))
    assert max_err < 5e-2, f"max abs err {max_err}"
    print("KERNEL_OK")
</pallas_src>

<mosaic_0001>
module attributes {stable_mosaic.version = 11 : i64} {
  func.func @_spconv_matmul_kernel(%arg0: i32, %arg1: i32, %arg2: memref<1x64x16xbf16, #tpu.memory_space<vmem>>, %arg3: memref<1x64x16xbf16, #tpu.memory_space<vmem>>, %arg4: memref<16x64xbf16, #tpu.memory_space<vmem>>, %arg5: memref<16x64xbf16, #tpu.memory_space<vmem>>, %arg6: memref<1x16x16xbf16, #tpu.memory_space<vmem>>, %arg7: memref<1x16x16xbf16, #tpu.memory_space<vmem>>, %arg8: memref<1x1x16x4xf32, #tpu.memory_space<vmem>>) attributes {dimension_semantics = [#tpu.dimension_semantics<parallel>, #tpu.dimension_semantics<parallel>], iteration_bounds = array<i64: 2, 1>, scalar_prefetch = 0 : i64, scratch_operands = 0 : i64, tpu.core_type = #tpu.core_type<tc>, window_params = [{transform_indices = @transform_0, window_bounds = array<i64: 1, 64, 16>}, {transform_indices = @transform_1, window_bounds = array<i64: 1, 64, 16>}, {pipeline_mode = #tpu.pipeline_mode<synchronous>, transform_indices = @transform_2, window_bounds = array<i64: 16, 64>}, {pipeline_mode = #tpu.pipeline_mode<synchronous>, transform_indices = @transform_3, window_bounds = array<i64: 16, 64>}, {transform_indices = @transform_4, window_bounds = array<i64: 1, 16, 16>}, {transform_indices = @transform_5, window_bounds = array<i64: 1, 16, 16>}, {transform_indices = @transform_6, window_bounds = array<i64: 1, 1, 16, 4>}]} {
    %c0 = arith.constant 0 : index
    %c0_0 = arith.constant 0 : index
    %0 = vector.load %arg4[%c0, %c0_0] : memref<16x64xbf16, #tpu.memory_space<vmem>>, vector<16x64xbf16>
    %c0_1 = arith.constant 0 : index
    %c0_2 = arith.constant 0 : index
    %c0_3 = arith.constant 0 : index
    %1 = vector.load %arg2[%c0_1, %c0_2, %c0_3] : memref<1x64x16xbf16, #tpu.memory_space<vmem>>, vector<1x64x16xbf16>
    %2 = vector.shape_cast %1 : vector<1x64x16xbf16> to vector<64x16xbf16>
    %cst = arith.constant dense<0.000000e+00> : vector<16x16xf32>
    %3 = tpu.matmul %0, %2, %cst {dimension_numbers = #tpu.dot_dimension_numbers<[1], [0], [0], [1], [0, 0, 1, 1], [], []>} : vector<16x64xbf16>, vector<64x16xbf16>, vector<16x16xf32> -> vector<16x16xf32>
    %c0_4 = arith.constant 0 : index
    %c0_5 = arith.constant 0 : index
    %4 = vector.load %arg5[%c0_4, %c0_5] : memref<16x64xbf16, #tpu.memory_space<vmem>>, vector<16x64xbf16>
    %c0_6 = arith.constant 0 : index
    %c0_7 = arith.constant 0 : index
    %c0_8 = arith.constant 0 : index
    %5 = vector.load %arg3[%c0_6, %c0_7, %c0_8] : memref<1x64x16xbf16, #tpu.memory_space<vmem>>, vector<1x64x16xbf16>
    %6 = vector.shape_cast %5 : vector<1x64x16xbf16> to vector<64x16xbf16>
    %cst_9 = arith.constant dense<0.000000e+00> : vector<16x16xf32>
    %7 = tpu.matmul %4, %6, %cst_9 {dimension_numbers = #tpu.dot_dimension_numbers<[1], [0], [0], [1], [0, 0, 1, 1], [], []>} : vector<16x64xbf16>, vector<64x16xbf16>, vector<16x16xf32> -> vector<16x16xf32>
    %8 = arith.truncf %3 : vector<16x16xf32> to vector<16x16xbf16>
    %c0_10 = arith.constant 0 : index
    %c0_11 = arith.constant 0 : index
    %c0_12 = arith.constant 0 : index
    %9 = vector.load %arg6[%c0_10, %c0_11, %c0_12] : memref<1x16x16xbf16, #tpu.memory_space<vmem>>, vector<1x16x16xbf16>
    %10 = vector.shape_cast %9 : vector<1x16x16xbf16> to vector<16x16xbf16>
    %11 = vector.shape_cast %8 : vector<16x16xbf16> to vector<1x16x16xbf16>
    tpu.vector_store %arg6[%c0_10, %c0_11, %c0_12], %11 {strides = array<i32>} : memref<1x16x16xbf16, #tpu.memory_space<vmem>>, vector<1x16x16xbf16>,
    %12 = arith.truncf %7 : vector<16x16xf32> to vector<16x16xbf16>
    %c0_13 = arith.constant 0 : index
    %c0_14 = arith.constant 0 : index
    %c0_15 = arith.constant 0 : index
    %13 = vector.load %arg7[%c0_13, %c0_14, %c0_15] : memref<1x16x16xbf16, #tpu.memory_space<vmem>>, vector<1x16x16xbf16>
    %14 = vector.shape_cast %13 : vector<1x16x16xbf16> to vector<16x16xbf16>
    %15 = vector.shape_cast %12 : vector<16x16xbf16> to vector<1x16x16xbf16>
    tpu.vector_store %arg7[%c0_13, %c0_14, %c0_15], %15 {strides = array<i32>} : memref<1x16x16xbf16, #tpu.memory_space<vmem>>, vector<1x16x16xbf16>,
    %cst_16 = arith.constant dense<0.000000e+00> : vector<16xf32>
    %16 = vector.multi_reduction <add>, %3, %cst_16 [1] : vector<16x16xf32> to vector<16xf32>
    %17 = vector.shape_cast %16 : vector<16xf32> to vector<16x1xf32>
    %c0_17 = arith.constant 0 : index
    %c0_18 = arith.constant 0 : index
    %c0_19 = arith.constant 0 : index
    %c0_20 = arith.constant 0 : index
    %18 = vector.load %arg8[%c0_17, %c0_18, %c0_19, %c0_20] : memref<1x1x16x4xf32, #tpu.memory_space<vmem>>, vector<1x1x16x1xf32>
    %19 = vector.shape_cast %18 : vector<1x1x16x1xf32> to vector<16x1xf32>
    %20 = vector.shape_cast %17 : vector<16x1xf32> to vector<1x1x16x1xf32>
    tpu.vector_store %arg8[%c0_17, %c0_18, %c0_19, %c0_20], %20 {strides = array<i32>} : memref<1x1x16x4xf32, #tpu.memory_space<vmem>>, vector<1x1x16x1xf32>,
    %21 = arith.mulf %3, %3 : vector<16x16xf32>
    %cst_21 = arith.constant dense<0.000000e+00> : vector<16xf32>
    %22 = vector.multi_reduction <add>, %21, %cst_21 [1] : vector<16x16xf32> to vector<16xf32>
    %23 = vector.shape_cast %22 : vector<16xf32> to vector<16x1xf32>
    %c0_22 = arith.constant 0 : index
    %c0_23 = arith.constant 0 : index
    %c0_24 = arith.constant 0 : index
    %c1 = arith.constant 1 : index
    %24 = vector.load %arg8[%c0_22, %c0_23, %c0_24, %c1] : memref<1x1x16x4xf32, #tpu.memory_space<vmem>>, vector<1x1x16x1xf32>
    %25 = vector.shape_cast %24 : vector<1x1x16x1xf32> to vector<16x1xf32>
    %26 = vector.shape_cast %23 : vector<16x1xf32> to vector<1x1x16x1xf32>
    tpu.vector_store %arg8[%c0_22, %c0_23, %c0_24, %c1], %26 {strides = array<i32>} : memref<1x1x16x4xf32, #tpu.memory_space<vmem>>, vector<1x1x16x1xf32>,
    %cst_25 = arith.constant dense<0.000000e+00> : vector<16xf32>
    %27 = vector.multi_reduction <add>, %7, %cst_25 [1] : vector<16x16xf32> to vector<16xf32>
    %28 = vector.shape_cast %27 : vector<16xf32> to vector<16x1xf32>
    %c0_26 = arith.constant 0 : index
    %c0_27 = arith.constant 0 : index
    %c0_28 = arith.constant 0 : index
    %c2 = arith.constant 2 : index
    %29 = vector.load %arg8[%c0_26, %c0_27, %c0_28, %c2] : memref<1x1x16x4xf32, #tpu.memory_space<vmem>>, vector<1x1x16x1xf32>
    %30 = vector.shape_cast %29 : vector<1x1x16x1xf32> to vector<16x1xf32>
    %31 = vector.shape_cast %28 : vector<16x1xf32> to vector<1x1x16x1xf32>
    tpu.vector_store %arg8[%c0_26, %c0_27, %c0_28, %c2], %31 {strides = array<i32>} : memref<1x1x16x4xf32, #tpu.memory_space<vmem>>, vector<1x1x16x1xf32>,
    %32 = arith.mulf %7, %7 : vector<16x16xf32>
    %cst_29 = arith.constant dense<0.000000e+00> : vector<16xf32>
    %33 = vector.multi_reduction <add>, %32, %cst_29 [1] : vector<16x16xf32> to vector<16xf32>
    %34 = vector.shape_cast %33 : vector<16xf32> to vector<16x1xf32>
    %c0_30 = arith.constant 0 : index
    %c0_31 = arith.constant 0 : index
    %c0_32 = arith.constant 0 : index
    %c3 = arith.constant 3 : index
    %35 = vector.load %arg8[%c0_30, %c0_31, %c0_32, %c3] : memref<1x1x16x4xf32, #tpu.memory_space<vmem>>, vector<1x1x16x1xf32>
    %36 = vector.shape_cast %35 : vector<1x1x16x1xf32> to vector<16x1xf32>
    %37 = vector.shape_cast %34 : vector<16x1xf32> to vector<1x1x16x1xf32>
    tpu.vector_store %arg8[%c0_30, %c0_31, %c0_32, %c3], %37 {strides = array<i32>} : memref<1x1x16x4xf32, #tpu.memory_space<vmem>>, vector<1x1x16x1xf32>,
    return
  }
  func.func @transform_0(%arg0: i32, %arg1: i32) -> (i32, i32, i32) {
    %c0_i32 = arith.constant 0 : i32
    %c0_i32_0 = arith.constant 0 : i32
    return %arg0, %c0_i32, %arg1 : i32, i32, i32
  }
  func.func @transform_1(%arg0: i32, %arg1: i32) -> (i32, i32, i32) {
    %c0_i32 = arith.constant 0 : i32
    %c0_i32_0 = arith.constant 0 : i32
    return %arg0, %c0_i32, %arg1 : i32, i32, i32
  }
  func.func @transform_2(%arg0: i32, %arg1: i32) -> (i32, i32) {
    %c0_i32 = arith.constant 0 : i32
    %c0_i32_0 = arith.constant 0 : i32
    %c0_i32_1 = arith.constant 0 : i32
    return %c0_i32, %c0_i32_0 : i32, i32
  }
  func.func @transform_3(%arg0: i32, %arg1: i32) -> (i32, i32) {
    %c0_i32 = arith.constant 0 : i32
    %c0_i32_0 = arith.constant 0 : i32
    %c0_i32_1 = arith.constant 0 : i32
    return %c0_i32, %c0_i32_0 : i32, i32
  }
  func.func @transform_4(%arg0: i32, %arg1: i32) -> (i32, i32, i32) {
    %c0_i32 = arith.constant 0 : i32
    %c0_i32_0 = arith.constant 0 : i32
    return %arg0, %c0_i32, %arg1 : i32, i32, i32
  }
  func.func @transform_5(%arg0: i32, %arg1: i32) -> (i32, i32, i32) {
    %c0_i32 = arith.constant 0 : i32
    %c0_i32_0 = arith.constant 0 : i32
    return %arg0, %c0_i32, %arg1 : i32, i32, i32
  }
  func.func @transform_6(%arg0: i32, %arg1: i32) -> (i32, i32, i32, i32) {
    %c0_i32 = arith.constant 0 : i32
    %c0_i32_0 = arith.constant 0 : i32
    %c0_i32_1 = arith.constant 0 : i32
    return %arg0, %arg1, %c0_i32, %c0_i32_0 : i32, i32, i32, i32
  }
}

</mosaic_0001>

<bundles_post_ra>
// kernel: tpu_custom_call.1
= control target key start
LH: loop header
LB: loop body
LE: loop exit
PB: predicated region body
PF: predicated region fallthrough
CT: control target
= control target key end

     0   :  { %s1175_s0 = inlined_call_operand.vmem [shape: bf16[2,64,16], index: 0, kind: input, shape index: {}]   ;;  %s1176_s1 = inlined_call_operand.vmem [shape: bf16[2,64,16], index: 1, kind: input, shape index: {}]   ;;  %s1177_s2 = inlined_call_operand.vmem [shape: bf16[16,64], index: 2, kind: input, shape index: {}]   ;;  %s1178_s3 = inlined_call_operand.vmem [shape: bf16[16,64], index: 3, kind: input, shape index: {}]   ;;  %s1179_s4 = inlined_call_operand.hbm [shape: bf16[2,16,16], index: 4, kind: output, shape index: {0}]   ;;  %s1180_s5 = inlined_call_operand.hbm [shape: bf16[2,16,16], index: 5, kind: output, shape index: {1}]   ;;  %s1181_s6 = inlined_call_operand.vmem [shape: f32[2,1,16,4], index: 6, kind: output, shape index: {2}]  }
   0x1   :  { %1182 = sst [smem:[#allocation8_spill]] %s1175_s0 }
   0x2   :  { %1183 = sst [smem:[#allocation9_spill]] %s1176_s1 }
   0x3   :  { %12 = vsyncpa [#allocation3], 0 }
   0x4   :  { %14 = vsyncpa [#allocation3 + $0x1], 0 }
   0x5   :  { %15 = vsyncpa [#allocation5], 0 }
   0x6   :  { %17 = vsyncpa [#allocation5 + $0x1], 0  ;;  %s1018_s21 = smov 0   ;;  %s1020_s22 = smov 0  }
   0x7   :  { %s1022_s23 = smov 0   ;;  %s1024_s24 = smov 0  }
   0x8   :  { %s1026_s25 = smov 0   ;;  %s1028_s26 = smov 0  }
   0x9 LB: > { %s729_s27 = sadd.s32 4294967295, %s979_s26   ;;  %s730_s28 = sadd.s32 4294967294, %s979_s26   ;;  %s979_s26 = sphi %s1028_s26, %s23_s26   ;;  %s975_s25 = sphi %s1026_s25, %s1192_s25   ;;  %s971_s24 = sphi %s1024_s24, %s1191_s24   ;;  %s967_s23 = sphi %s1022_s23, %s1190_s23   ;;  %s963_s22 = sphi %s1020_s22, %s1189_s22   ;;  %s959_s21 = sphi %s1018_s21, %s1188_s21  }
   0xa   : > { %s35_s29 = sadd.s32 1, %s975_s25  ;;  %s142_s30 = sadd.s32 1, %s967_s23 }
   0xb   : > { %p37_p0 = scmp.ge.s32.totalorder %s35_s29, 2  ;;  %p152_p1 = scmp.ne.s32.totalorder %s967_s23, %s963_s22 }
   0xc   : > { %p153_p2 = scmp.eq.s32.totalorder %s729_s27, 1  ;;  %p158_p3 = scmp.ne.s32.totalorder %s963_s22, %s959_s21 }
   0xd   : > { %s1194_s29 = smov (%p37_p0, %s35_s29), 0  ;;  %p159_p5 = scmp.eq.s32.totalorder %s730_s28, 1 }
   0xe   : > { %p1058_p4 = por %p153_p2, %p152_p1  ;;  %s137_s8 = ssub.s32 %s975_s25, %s1194_s29 }
   0xf   : > { %p733_p6 = scmp.ge.s32.totalorder %s979_s26, 1  ;;  %p140_p7 = scmp.eq.s32.totalorder %s137_s8, 0 }
  0x10   : > { %p1065_p8 = por %p159_p5, %p158_p3  ;;  %p261_p9 = scmp.lt.s32.totalorder %s979_s26, 3 }
  0x11   : > { %s1071_s10 = scalar_select %p140_p7, %s967_s23, %s142_s30  }
  0x12   : > { %p262_p10 = pnand %p733_p6, %p261_p9 }
  0x13   : > { %p316_p11 = scmp.lt.s32.totalorder (!%p262_p10), %s971_s24, 1  ;;  %s1186_s0 = sld [smem:[#allocation8_spill]] (!%p262_p10) }
  0x14   : > { %265 = sbr.rel (%p262_p10) target bundleno = 317 (0x13d), region = 36  ;;  %s1187_s1 = sld [smem:[#allocation9_spill]] (!%p262_p10) }
  0x15   : > { %s1091_s30 = sand.u32 (!%p262_p10), 1, %s963_s22   ;;  %s805_s14 = sshll.u32 (!%p262_p10), %s971_s24, 3 }
  0x16   : > { %s734_s8 = sshll.u32 (!%p262_p10), %s1091_s30, 3  ;;  %s532_s17 = scalar_lea.hbm (!%p262_p10), %s1179_s4, %s805_s14 }
  0x17   : > { %s304_s13 = scalar_lea.vmem (!%p262_p10), [#allocation4], %s734_s8  ;;  %s550_s20 = scalar_lea.hbm (!%p262_p10), %s1180_s5, %s805_s14 }
  0x18   : > { %s535_s28 = sshll.u32 (!%p262_p10), %s532_s17, 4  ;;  %s506_s14 = scalar_lea.sflag (!%p262_p10), [#allocation3], %s1091_s30  ;;  %s1108_s28 = int_to_ptr.hbm [resolvable:$true] %s535_s28 }
  0x19   : > { %s1075_s11 = scalar_select %p316_p11, %s971_s24, 1  ;;  %v795_v8 = vld [vmem:[%s1177_s2] sm:$0xff]  ;;  %vm381_vm0 = vcmask 523264   ;;  %vm464_vm1 = vcmask 130048   ;;  %vm457_vm2 = vcmask 125952  }
  0x1a   : > { %v800_v9 = vld [vmem:[%s1178_s3] sm:$0xff]  ;;  %s551_s24 = sshll.u32 %s304_s13, 4  ;;  %s1115_s24 = int_to_ptr.vmem [resolvable:$true] %s551_s24 }
  0x1b   : > { %s792_s12 = sshll.u32 %s1075_s11, 5 }
  0x1c   : > { %s323_s15 = scalar_lea.vmem %s1186_s0, %s792_s12  ;;  %s331_s18 = scalar_lea.vmem %s1187_s1, %s792_s12 }
  0x1d   : > { %v799_v0 = vld [vmem:[%s323_s15 + $0x18] sm:$0xff]  ;;  %v798_v2 = vld [vmem:[%s323_s15 + $0x10] sm:$0xff]  ;;  %v797_v4 = vld [vmem:[%s323_s15 + $0x8] sm:$0xff]  ;;  %s297_s12 = scalar_lea.vmem [#allocation2], %s734_s8  ;;  %s553_s8 = sshll.u32 %s550_s20, 4  ;;  %s1117_s8 = int_to_ptr.hbm [resolvable:$true] %s553_s8 }
  0x1e   : > { %v804_v1 = vld [vmem:[%s331_s18 + $0x18] sm:$0xff]  ;;  %389 = vmatpush.bf16.msra.mxu0 %v799_v0  ;;  %v803_v3 = vld [vmem:[%s331_s18 + $0x10] sm:$0xff]  ;;  %v802_v5 = vld [vmem:[%s331_s18 + $0x8] sm:$0xff]  ;;  %s533_s27 = sshll.u32 %s297_s12, 4  ;;  %s1106_s27 = int_to_ptr.vmem [resolvable:$true] %s533_s27 }
  0x1f   : > { %445 = vmatpush.bf16.msra.mxu1 %v804_v1  ;;  %v796_v6 = vld [vmem:[%s323_s15] sm:$0xff]  ;;  %s883_s15 = sshra.s32 %s1108_s28, 4  ;;  %s884_s15 = int_to_ptr.hbm [resolvable:$true] %s883_s15 }
  0x20   : > { %v801_v7 = vld [vmem:[%s331_s18] sm:$0xff]  ;;  %s885_s16 = scalar_lea.hbm %s884_s15, 8  ;;  %s889_s18 = scalar_lea.hbm %s1179_s4, 16 }
  0x21   : > { %p886_p12 = scmp.ne.s32.totalorder %s884_s15, %s885_s16  ;;  %p890_p1 = scmp.lt.s32.totalorder %s884_s15, %s1179_s4 }
  0x22   : > { %390 = vmatpush.bf16.msra.mxu0 %v798_v2  ;;  %p891_p2 = scmp.lt.s32.totalorder %s889_s18, %s885_s16 }
  0x23   : > { %446 = vmatpush.bf16.msra.mxu1 %v803_v3  ;;  %p887_p13 = pnand %p886_p12, %p1058_p4 }
  0x24   : > { %p892_p3 = por %p891_p2, %p890_p1 }
  0x25   : > { %p888_p0 = pneg %p887_p13 }
  0x26   : > { %391 = vmatpush.bf16.msra.mxu0 %v797_v4 }
  0x27   : > { %447 = vmatpush.bf16.msra.mxu1 %v802_v5  ;;  %p893_p5 = pnand %p892_p3, %p888_p0 }
  0x2a   : > { %392 = vmatpush.bf16.msra.mxu0 %v796_v6 }
  0x2b   : > { %448 = vmatpush.bf16.msra.mxu1 %v801_v7 }
  0x2d   : > { %762 = vmatmul.msk.bf16.vlgmr.msra.gmra.mxu0 %vm381_vm0, %v795_v8 }
  0x2e   : > { %783 = vmatmul.msk.bf16.vlgmr.msra.gmra.mxu1 %vm381_vm0, %v800_v9 }
  0xaa   : > { %v394_v10 = vpop.f32.mrf.mxu0 }
  0xab   : > { %v450_v11 = vpop.f32.mrf.mxu1  ;;  %v455_v12 = vpack.c.bf16 %v394_v10, %v394_v10  ;;  %v465_v15 = vsel %vm464_vm1, %v394_v10, 0.0  ;;  %v474_v16 = vmul.f32 %v394_v10, %v394_v10 }
  0xac   : > { %v460_v13 = vpack.c.bf16 %v450_v11, %v450_v11  ;;  %v485_v14 = vsel %vm464_vm1, %v450_v11, 0.0  ;;  %466 = vadd.xlane.f32.xlu0 %v465_v15 }
  0xad   : > { %486 = vadd.xlane.f32.xlu2 %v485_v14  ;;  %458 = vst.msk [vmem:[%s297_s12] sm:$0xf] %vm457_vm2, %v455_v12  ;;  %v476_v17 = vsel %vm464_vm1, %v474_v16, 0.0 }
  0xae   : > { %462 = vst.msk [vmem:[%s304_s13] sm:$0xf] %vm457_vm2, %v460_v13  ;;  %477 = vadd.xlane.f32.xlu1 %v476_v17 }
  0xb2   : > { %v396_v18 = vpop.f32.mrf.mxu0 }
  0xb3   : > { %v452_v19 = vpop.f32.mrf.mxu1  ;;  %v456_v20 = vpack.c.bf16 %v396_v18, %v396_v18  ;;  %v475_v21 = vmul.f32 %v396_v18, %v396_v18  ;;  %v468_v24 = vsel %vm464_vm1, %v396_v18, 0.0 }
  0xb4   : > { %v461_v22 = vpack.c.bf16 %v452_v19, %v452_v19  ;;  %v488_v23 = vsel %vm464_vm1, %v452_v19, 0.0  ;;  %469 = vadd.xlane.f32.xlu0 %v468_v24 }
  0xb5   : > { %459 = vst.msk [vmem:[%s297_s12 + $0x4] sm:$0xf] %vm457_vm2, %v456_v20  ;;  %489 = vadd.xlane.f32.xlu2 %v488_v23  ;;  %v479_v25 = vsel %vm464_vm1, %v475_v21, 0.0 }
  0xb6   : > { %463 = vst.msk [vmem:[%s304_s13 + $0x4] sm:$0xf] %vm457_vm2, %v461_v22  ;;  %480 = vadd.xlane.f32.xlu1 %v479_v25 }
  0xb7   : > { %896 = shalt.err (!%p893_p5)
}
  0xb8   : > { %s981_s13 = smov 64   ;;  %s982_s0 = smov 4   ;;  %v494_v26 = vmul.f32 %v450_v11, %v450_v11 }
  0xb9   : > { %807 = dma.vmem_to_hbm [thread:$0]  (%p1058_p4), %s1106_s27, 128, %s1108_s28, %s506_s14, %s981_s13, %s981_s13, %s982_s0  }
  0xba   : > { %s511_s12 = scalar_lea.sflag [#allocation5], %s1091_s30  ;;  %s911_s17 = sshra.s32 %s1117_s8, 4  ;;  %s912_s17 = int_to_ptr.hbm [resolvable:$true] %s911_s17 }
  0xbb   : > { %s913_s19 = scalar_lea.hbm %s912_s17, 8  ;;  %s917_s18 = scalar_lea.hbm %s1180_s5, 16 }
  0xbc   : > { %p914_p6 = scmp.ne.s32.totalorder %s912_s17, %s913_s19  ;;  %p918_p10 = scmp.lt.s32.totalorder %s912_s17, %s1180_s5 }
  0xbd   : > { %p919_p11 = scmp.lt.s32.totalorder %s917_s18, %s913_s19 }
  0xbe   : > { %p915_p7 = pnand %p914_p6, %p1058_p4 }
  0xbf   : > { %p920_p12 = por %p919_p11, %p918_p10 }
  0xc0   : > { %p916_p9 = pneg %p915_p7 }
  0xc2   : > { %p921_p13 = pnand %p920_p12, %p916_p9 }
  0xc4   : > { %924 = shalt.err (!%p921_p13)
}
  0xc5   : > { %808 = dma.vmem_to_hbm [thread:$0]  (%p1058_p4), %s1115_s24, 128, %s1117_s8, %s511_s12, %s981_s13, %s981_s13, %s982_s0   ;;  %v495_v27 = vmul.f32 %v452_v19, %v452_v19  ;;  %v496_v28 = vsel %vm464_vm1, %v494_v26, 0.0  ;;  %vm471_vm3 = vcmask 7168   ;;  %vm482_vm4 = vcmask 15368  }
  0xc6   : > { %497 = vadd.xlane.f32.xlu0 %v496_v28  ;;  %s794_s30 = sshll.u32 %s1075_s11, 4  ;;  %vm491_vm5 = vcmask 23568   ;;  %vm502_vm6 = vcmask 31768  }
  0xc7   : > { %v499_v29 = vsel %vm464_vm1, %v495_v27, 0.0  ;;  %s340_s28 = scalar_lea.vmem %s1181_s6, %s794_s30 }
  0xc8   : > { %500 = vadd.xlane.f32.xlu1 %v499_v29 }
 0x11f   : > { %v467_v30 = vpop.xlane.xlu0 %466 }
 0x120   : > { %472 = vst.msk [vmem:[%s340_s28] sm:$0xff] %vm471_vm3, %v467_v30  ;;  %v487_v31 = vpop.xlane.xlu2 %486 }
 0x121   : > { %v478_v32 = vpop.xlane.xlu1 %477 }
 0x122   : > { %483 = vst.msk [vmem:[%s340_s28] sm:$0xff] %vm482_vm4, %v478_v32 }
 0x123   : > { %492 = vst.msk [vmem:[%s340_s28] sm:$0xff] %vm491_vm5, %v487_v31 }
 0x127   : > { %v470_v33 = vpop.xlane.xlu0 %469 }
 0x128   : > { %473 = vst.msk [vmem:[%s340_s28 + $0x8] sm:$0xff] %vm471_vm3, %v470_v33  ;;  %v490_v35 = vpop.xlane.xlu2 %489 }
 0x129   : > { %v481_v34 = vpop.xlane.xlu1 %480 }
 0x12a   : > { %484 = vst.msk [vmem:[%s340_s28 + $0x8] sm:$0xff] %vm482_vm4, %v481_v34 }
 0x12b   : > { %493 = vst.msk [vmem:[%s340_s28 + $0x8] sm:$0xff] %vm491_vm5, %v490_v35 }
 0x139   : > { %v498_v36 = vpop.xlane.xlu0 %497 }
 0x13a   : > { %503 = vst.msk [vmem:[%s340_s28] sm:$0xff] %vm502_vm6, %v498_v36 }
 0x13b   : > { %v501_v37 = vpop.xlane.xlu1 %500 }
 0x13c   : > { %504 = vst.msk [vmem:[%s340_s28 + $0x8] sm:$0xff] %vm502_vm6, %v501_v37 }
 0x13d PF: > { %p818_p4 = scmp.ge.s32.totalorder %s979_s26, 2  ;;  %s571_s0 = sand.u32 1, %s959_s21  }
 0x13e   : > { %s572_s7 = scalar_lea.sflag [#allocation3], %s571_s0 }
 0x13f   : > { %p812_p0 = pnand %p818_p4, %p1065_p8 }
 0x141   : > { %p813_p1 = pneg %p812_p0 }
 0x143   : > { %950 = dma.done.wait (%p813_p1), %s572_s7, 128  }
 0x144   : > { %952 = vsyncadd (%p813_p1), %s572_s7, 4294967168  ;;  %s582_s11 = scalar_lea.sflag [#allocation5], %s571_s0 }
 0x145   : > { %954 = dma.done.wait (%p813_p1), %s582_s11, 128  }
 0x146   : > { %956 = vsyncadd (%p813_p1), %s582_s11, 4294967168  ;;  %s23_s26 = sadd.s32 1, %s979_s26   ;;  %s1188_s21 = smov %s963_s22 }
 0x147   : > { %p20_p2 = scmp.ge.s32.totalorder %s23_s26, 4   ;;  %s1189_s22 = smov %s967_s23 }
 0x148   : > { %s1190_s23 = smov %s1071_s10  ;;  %s1191_s24 = smov %s975_s25 }
 0x149   : > { %s1192_s25 = smov %s1194_s29  ;;  %22 = sbr.rel (!%p20_p2) target bundleno = 9 (0x9), region = 103 }
 0x14e   :  { %600 = vsyncpa [#allocation3], 1 }
 0x14f   :  { %602 = vsyncpa [#allocation3 + $0x1], 1 }
 0x150   :  { %603 = vsyncpa [#allocation5], 1 }
 0x151   :  { %605 = vsyncpa [#allocation5 + $0x1], 1 }

</bundles_post_ra>
